<compile_context>
chip_gen: v6e
topology: v6e:2x2x1
jax: 0.10.0
libtpu: 0.0.40
codegen_flags: <defaults>
</compile_context>

<pallas_src>
import jax
import jax.numpy as jnp
from jax.experimental import pallas as pl
from jax.experimental.pallas import tpu as pltpu

OUT_LANES = 8  # final layer padded from 1 -> 8 output columns (cheap writeback)


def fcnet_kernel(x_ref, w1_ref, b1_ref, w2_ref, b2_ref, w3_ref, b3_ref, o_ref):
    # One batch tile per grid step; all three layers fused.  Matmuls run in the
    # weight dtype (bf16 or f32) with f32 accumulation; biases/activations f32.
    cd = w1_ref.dtype
    x = x_ref[...]                                                        # (TB, Din)
    h = jnp.dot(x, w1_ref[...], preferred_element_type=jnp.float32) + b1_ref[...]
    h = jnp.maximum(h, 0.0).astype(cd)                                    # ReLU
    h = jnp.dot(h, w2_ref[...], preferred_element_type=jnp.float32) + b2_ref[...]
    h = jnp.maximum(h, 0.0).astype(cd)                                    # ReLU
    z = jnp.dot(h, w3_ref[...], preferred_element_type=jnp.float32) + b3_ref[...]
    o_ref[...] = jax.nn.sigmoid(z).astype(o_ref.dtype)                    # Sigmoid


def _round_up(x, m):
    return (x + m - 1) // m * m


def init_params(key, fmaps, fc_units):
    """Deterministic init mirroring nn.Linear's uniform(-1/sqrt(fan_in), +)."""
    d_in = fmaps * 2
    k = jax.random.split(key, 6)

    def lin(kw, kb, fan_in, fan_out):
        bound = 1.0 / jnp.sqrt(fan_in)
        w = jax.random.uniform(kw, (fan_in, fan_out), jnp.float32, -bound, bound)
        b = jax.random.uniform(kb, (1, fan_out), jnp.float32, -bound, bound)
        return w, b

    w1, b1 = lin(k[0], k[1], d_in, fc_units)
    w2, b2 = lin(k[2], k[3], fc_units, fc_units)
    w3, b3 = lin(k[4], k[5], fc_units, 1)
    return (w1, b1, w2, b2, w3, b3)


def prepare_params(params, compute_dtype=jnp.bfloat16):
    """One-time prep: pad w3/b3 to OUT_LANES columns, cast weights to the MXU
    compute dtype. Biases stay float32 (they add to f32 accumulators)."""
    w1, b1, w2, b2, w3, b3 = params
    w3p = jnp.pad(w3, ((0, 0), (0, OUT_LANES - w3.shape[1])))
    b3p = jnp.pad(b3, ((0, 0), (0, OUT_LANES - b3.shape[1])))
    return (
        w1.astype(compute_dtype), b1.astype(jnp.float32),
        w2.astype(compute_dtype), b2.astype(jnp.float32),
        w3p.astype(compute_dtype), b3p.astype(jnp.float32),
    )


def _vmem_limit_bytes():
    # ~75% of physical per-core VMEM (48 MiB on v7x), capped at 96 MiB so
    # v5e/v6e's 128 MiB is still usable for large fc_units.
    try:
        cap = int(pltpu.get_tpu_info().vmem_capacity_bytes)
    except Exception:   # hardware query only; kernel errors are never masked here
        cap = 64 * 1024 * 1024
    return min(int(cap * 0.75), 96 * 1024 * 1024)


def fcnet_forward(x, prepared_params, *, tile_b_max=2048):
    """x: (B, fmaps*2) float32. prepared_params: from prepare_params().
    Returns (B, 1) float32."""
    w1, b1, w2, b2, w3, b3 = prepared_params
    B, d_in = x.shape
    assert w1.shape[0] == d_in
    fc = w1.shape[1]
    out_p = w3.shape[1]
    cd = w1.dtype
    ebytes = jnp.dtype(cd).itemsize

    # --- VMEM budget -> largest batch tile that fits -------------------------
    vmem_limit = _vmem_limit_bytes()
    budget = vmem_limit - 4 * 1024 * 1024  # headroom for Mosaic internal scratch
    resident_w = (d_in * fc + fc * fc + fc * out_p) * ebytes + (2 * fc + out_p) * 4
    # TODO(synk): for fc_units >~ 4K (bf16 w2 > ~32 MiB) add a K-tiled layer-2
    # path (reduction grid axis + accumulator scratch) instead of resident w2.

    def fits(tb):
        per_tile = (2 * tb * d_in * ebytes        # x double buffer
                    + 2 * tb * out_p * 4          # out double buffer
                    + 3 * tb * fc * 4)            # live f32 intermediates
        return resident_w + per_tile <= budget

    tb_cap = 8
    for cand in (2048, 1024, 512, 256, 128, 64, 32, 16, 8):
        if cand <= tile_b_max and fits(cand):
            tb_cap = cand
            break

    # --- Grid / tile: minimal padding waste, even grid for v7x's two TCs -----
    n_tiles = pl.cdiv(B, tb_cap)
    if n_tiles % 2 == 1 and B > 8:
        n_tiles += 1
    tb = max(8, _round_up(pl.cdiv(B, n_tiles), 8))
    n_tiles = pl.cdiv(B, tb)
    bp = n_tiles * tb

    xc = x.astype(cd)
    if bp != B:
        xc = jnp.pad(xc, ((0, bp - B), (0, 0)))  # batch rows only; no lane pad

    # Constant-index operands: single pipeline buffer (block never changes).
    single_buffer = hasattr(pl, "Buffered")
    const_kw = dict(pipeline_mode=pl.Buffered(1)) if single_buffer else {}

    def const_spec(shape):
        return pl.BlockSpec(shape, lambda i: (0, 0), **const_kw)

    out = pl.pallas_call(
        fcnet_kernel,
        out_shape=jax.ShapeDtypeStruct((bp, out_p), jnp.float32),
        grid_spec=pltpu.PrefetchScalarGridSpec(
            num_scalar_prefetch=0,
            grid=(n_tiles,),
            in_specs=[
                pl.BlockSpec((tb, d_in), lambda i: (i, 0)),   # x tile (unpadded lanes)
                const_spec((d_in, fc)),                       # w1 (resident)
                const_spec((1, fc)),                          # b1
                const_spec((fc, fc)),                         # w2 (resident)
                const_spec((1, fc)),                          # b2
                const_spec((fc, out_p)),                      # w3 (8 output cols)
                const_spec((1, out_p)),                       # b3
            ],
            out_specs=pl.BlockSpec((tb, out_p), lambda i: (i, 0)),
        ),
        compiler_params=pltpu.CompilerParams(
            dimension_semantics=("parallel",),   # shard batch tiles across TCs
            vmem_limit_bytes=vmem_limit,
        ),
    )(xc, w1, b1, w2, b2, w3, b3)

    # Real result is rows [0, B) and column 0 of the narrow output slab.
    return out[:B, :1]


def fcnet_reference(x, params):
    """Pure-JAX f32 reference of the PyTorch forward pass."""
    w1, b1, w2, b2, w3, b3 = params
    z = jnp.maximum(x @ w1 + b1, 0.0)
    z = jnp.maximum(z @ w2 + b2, 0.0)
    return jax.nn.sigmoid(z @ w3 + b3)


if __name__ == "__main__":
    fmaps = 16        # -> input dim = fmaps * 2 = 32
    fc_units = 32
    batch = 512

    key = jax.random.PRNGKey(0)
    k_param, k_x = jax.random.split(key)
    params = init_params(k_param, fmaps, fc_units)
    x = jax.random.normal(k_x, (batch, fmaps * 2), dtype=jnp.float32)

    ref = fcnet_reference(x, params)

    # f32 compute path: exact parity with the reference.
    params_f32 = prepare_params(params, compute_dtype=jnp.float32)
    out_f32 = jax.block_until_ready(fcnet_forward(x, params_f32))
    assert out_f32.shape == (batch, 1)
    assert jnp.allclose(out_f32, ref, atol=2e-5, rtol=2e-5), "f32 mismatch vs reference"

    # bf16 compute path (default / fast): f32 accumulation, looser tolerance.
    params_bf16 = prepare_params(params)  # bfloat16 weights
    out_bf16 = jax.block_until_ready(fcnet_forward(x, params_bf16))
    assert out_bf16.shape == (batch, 1)
    assert jnp.allclose(out_bf16, ref, atol=5e-2), "bf16 mismatch vs reference"

    # Ragged-batch sanity check (batch-row padding path).
    out_small = jax.block_until_ready(fcnet_forward(x[:100], params_f32))
    assert out_small.shape == (100, 1)
    assert jnp.allclose(out_small, ref[:100], atol=2e-5, rtol=2e-5)

    print("KERNEL_OK")
</pallas_src>

<mosaic_0001>
module attributes {stable_mosaic.version = 11 : i64} {
  func.func @fcnet_kernel(%arg0: i32, %arg1: memref<256x32xf32, #tpu.memory_space<vmem>>, %arg2: memref<32x32xf32, #tpu.memory_space<vmem>>, %arg3: memref<1x32xf32, #tpu.memory_space<vmem>>, %arg4: memref<32x32xf32, #tpu.memory_space<vmem>>, %arg5: memref<1x32xf32, #tpu.memory_space<vmem>>, %arg6: memref<32x8xf32, #tpu.memory_space<vmem>>, %arg7: memref<1x8xf32, #tpu.memory_space<vmem>>, %arg8: memref<256x8xf32, #tpu.memory_space<vmem>>) attributes {dimension_semantics = [#tpu.dimension_semantics<parallel>], iteration_bounds = array<i64: 2>, scalar_prefetch = 0 : i64, scratch_operands = 0 : i64, tpu.core_type = #tpu.core_type<tc>, window_params = [{transform_indices = @transform_0, window_bounds = array<i64: 256, 32>}, {pipeline_mode = #tpu.pipeline_mode<synchronous>, transform_indices = @transform_1, window_bounds = array<i64: 32, 32>}, {pipeline_mode = #tpu.pipeline_mode<synchronous>, transform_indices = @transform_2, window_bounds = array<i64: 1, 32>}, {pipeline_mode = #tpu.pipeline_mode<synchronous>, transform_indices = @transform_3, window_bounds = array<i64: 32, 32>}, {pipeline_mode = #tpu.pipeline_mode<synchronous>, transform_indices = @transform_4, window_bounds = array<i64: 1, 32>}, {pipeline_mode = #tpu.pipeline_mode<synchronous>, transform_indices = @transform_5, window_bounds = array<i64: 32, 8>}, {pipeline_mode = #tpu.pipeline_mode<synchronous>, transform_indices = @transform_6, window_bounds = array<i64: 1, 8>}, {transform_indices = @transform_7, window_bounds = array<i64: 256, 8>}]} {
    %c0 = arith.constant 0 : index
    %c0_0 = arith.constant 0 : index
    %0 = vector.load %arg1[%c0, %c0_0] : memref<256x32xf32, #tpu.memory_space<vmem>>, vector<256x32xf32>
    %c0_1 = arith.constant 0 : index
    %c0_2 = arith.constant 0 : index
    %1 = vector.load %arg2[%c0_1, %c0_2] : memref<32x32xf32, #tpu.memory_space<vmem>>, vector<32x32xf32>
    %cst = arith.constant dense<0.000000e+00> : vector<256x32xf32>
    %2 = tpu.matmul %0, %1, %cst {dimension_numbers = #tpu.dot_dimension_numbers<[1], [0], [0], [1], [0, 0, 1, 1], [], []>} : vector<256x32xf32>, vector<32x32xf32>, vector<256x32xf32> -> vector<256x32xf32>
    %c0_3 = arith.constant 0 : index
    %c0_4 = arith.constant 0 : index
    %3 = vector.load %arg3[%c0_3, %c0_4] : memref<1x32xf32, #tpu.memory_space<vmem>>, vector<1x32xf32>
    %4 = vector.broadcast %3 : vector<1x32xf32> to vector<256x32xf32>
    %5 = arith.addf %2, %4 : vector<256x32xf32>
    %cst_5 = arith.constant 0.000000e+00 : f32
    %6 = vector.broadcast %cst_5 : f32 to vector<256x32xf32>
    %7 = arith.maximumf %5, %6 : vector<256x32xf32>
    %c0_6 = arith.constant 0 : index
    %c0_7 = arith.constant 0 : index
    %8 = vector.load %arg4[%c0_6, %c0_7] : memref<32x32xf32, #tpu.memory_space<vmem>>, vector<32x32xf32>
    %cst_8 = arith.constant dense<0.000000e+00> : vector<256x32xf32>
    %9 = tpu.matmul %7, %8, %cst_8 {dimension_numbers = #tpu.dot_dimension_numbers<[1], [0], [0], [1], [0, 0, 1, 1], [], []>} : vector<256x32xf32>, vector<32x32xf32>, vector<256x32xf32> -> vector<256x32xf32>
    %c0_9 = arith.constant 0 : index
    %c0_10 = arith.constant 0 : index
    %10 = vector.load %arg5[%c0_9, %c0_10] : memref<1x32xf32, #tpu.memory_space<vmem>>, vector<1x32xf32>
    %11 = vector.broadcast %10 : vector<1x32xf32> to vector<256x32xf32>
    %12 = arith.addf %9, %11 : vector<256x32xf32>
    %cst_11 = arith.constant 0.000000e+00 : f32
    %13 = vector.broadcast %cst_11 : f32 to vector<256x32xf32>
    %14 = arith.maximumf %12, %13 : vector<256x32xf32>
    %c0_12 = arith.constant 0 : index
    %c0_13 = arith.constant 0 : index
    %15 = vector.load %arg6[%c0_12, %c0_13] : memref<32x8xf32, #tpu.memory_space<vmem>>, vector<32x8xf32>
    %cst_14 = arith.constant dense<0.000000e+00> : vector<256x8xf32>
    %16 = tpu.matmul %14, %15, %cst_14 {dimension_numbers = #tpu.dot_dimension_numbers<[1], [0], [0], [1], [0, 0, 1, 1], [], []>} : vector<256x32xf32>, vector<32x8xf32>, vector<256x8xf32> -> vector<256x8xf32>
    %c0_15 = arith.constant 0 : index
    %c0_16 = arith.constant 0 : index
    %17 = vector.load %arg7[%c0_15, %c0_16] : memref<1x8xf32, #tpu.memory_space<vmem>>, vector<1x8xf32>
    %18 = vector.broadcast %17 : vector<1x8xf32> to vector<256x8xf32>
    %19 = arith.addf %16, %18 : vector<256x8xf32>
    %20 = arith.negf %19 : vector<256x8xf32>
    %21 = math.exp %20 : vector<256x8xf32>
    %cst_17 = arith.constant 1.000000e+00 : f32
    %22 = vector.broadcast %cst_17 : f32 to vector<256x8xf32>
    %23 = arith.addf %22, %21 : vector<256x8xf32>
    %24 = arith.divf %22, %23 : vector<256x8xf32>
    %c0_18 = arith.constant 0 : index
    %c0_19 = arith.constant 0 : index
    %25 = vector.load %arg8[%c0_18, %c0_19] : memref<256x8xf32, #tpu.memory_space<vmem>>, vector<256x8xf32>
    tpu.vector_store %arg8[%c0_18, %c0_19], %24 {strides = array<i32>} : memref<256x8xf32, #tpu.memory_space<vmem>>, vector<256x8xf32>,
    return
  }
  func.func @transform_0(%arg0: i32) -> (i32, i32) {
    %c0_i32 = arith.constant 0 : i32
    %c0_i32_0 = arith.constant 0 : i32
    return %arg0, %c0_i32 : i32, i32
  }
  func.func @transform_1(%arg0: i32) -> (i32, i32) {
    %c0_i32 = arith.constant 0 : i32
    %c0_i32_0 = arith.constant 0 : i32
    %c0_i32_1 = arith.constant 0 : i32
    return %c0_i32, %c0_i32_0 : i32, i32
  }
  func.func @transform_2(%arg0: i32) -> (i32, i32) {
    %c0_i32 = arith.constant 0 : i32
    %c0_i32_0 = arith.constant 0 : i32
    %c0_i32_1 = arith.constant 0 : i32
    return %c0_i32, %c0_i32_0 : i32, i32
  }
  func.func @transform_3(%arg0: i32) -> (i32, i32) {
    %c0_i32 = arith.constant 0 : i32
    %c0_i32_0 = arith.constant 0 : i32
    %c0_i32_1 = arith.constant 0 : i32
    return %c0_i32, %c0_i32_0 : i32, i32
  }
  func.func @transform_4(%arg0: i32) -> (i32, i32) {
    %c0_i32 = arith.constant 0 : i32
    %c0_i32_0 = arith.constant 0 : i32
    %c0_i32_1 = arith.constant 0 : i32
    return %c0_i32, %c0_i32_0 : i32, i32
  }
  func.func @transform_5(%arg0: i32) -> (i32, i32) {
    %c0_i32 = arith.constant 0 : i32
    %c0_i32_0 = arith.constant 0 : i32
    %c0_i32_1 = arith.constant 0 : i32
    return %c0_i32, %c0_i32_0 : i32, i32
  }
  func.func @transform_6(%arg0: i32) -> (i32, i32) {
    %c0_i32 = arith.constant 0 : i32
    %c0_i32_0 = arith.constant 0 : i32
    %c0_i32_1 = arith.constant 0 : i32
    return %c0_i32, %c0_i32_0 : i32, i32
  }
  func.func @transform_7(%arg0: i32) -> (i32, i32) {
    %c0_i32 = arith.constant 0 : i32
    %c0_i32_0 = arith.constant 0 : i32
    return %arg0, %c0_i32 : i32, i32
  }
}

</mosaic_0001>

<bundles_post_ra>
// kernel: tpu_custom_call.1
= control target key start
LH: loop header
LB: loop body
LE: loop exit
PB: predicated region body
PF: predicated region fallthrough
CT: control target
= control target key end

     0   :  { %s2266_s24 = smov 0   ;;  %s2642_s0 = inlined_call_operand.vmem [shape: f32[512,32], index: 0, kind: input, shape index: {}]   ;;  %s2643_s1 = inlined_call_operand.vmem [shape: f32[32,32], index: 1, kind: input, shape index: {}]   ;;  %s2644_s2 = inlined_call_operand.vmem [shape: f32[1,32], index: 2, kind: input, shape index: {}]   ;;  %s2645_s3 = inlined_call_operand.vmem [shape: f32[32,32], index: 3, kind: input, shape index: {}]   ;;  %s2646_s4 = inlined_call_operand.vmem [shape: f32[1,32], index: 4, kind: input, shape index: {}]   ;;  %s2647_s5 = inlined_call_operand.vmem [shape: f32[32,8], index: 5, kind: input, shape index: {}]   ;;  %s2648_s6 = inlined_call_operand.vmem [shape: f32[1,8], index: 6, kind: input, shape index: {}]   ;;  %s2649_s7 = inlined_call_operand.vmem [shape: f32[512,8], index: 7, kind: output, shape index: {}]  }
   0x1 LB: > { %s1656_s25 = sadd.s32 4294967295, %s2224_s24   ;;  %p1660_p0 = scmp.ge.s32.totalorder %s2224_s24, 1  ;;  %s2224_s24 = sphi %s2266_s24, %s17_s24  }
   0x2   : > { %p238_p1 = scmp.lt.s32.totalorder %s2224_s24, 3 }
   0x4   : > { %p239_p2 = pnand %p1660_p0, %p238_p1 }
   0x5   : > { %s1661_s30 = sshll.u32 (!%p239_p2), %s1656_s25, 5 }
   0x6   : > { %242 = sbr.rel (%p239_p2) target bundleno = 711 (0x2c7), region = 48  ;;  %p271_p3 = scmp.lt.s32.totalorder (!%p239_p2), %s1661_s30, 63 }
   0xb   : > { %v317_v0 = vld [vmem:[%s2643_s1 + $0x18] sm:$0xff]  ;;  %v316_v1 = vld [vmem:[%s2643_s1 + $0x10] sm:$0xff]  ;;  %v315_v2 = vld [vmem:[%s2643_s1 + $0x8] sm:$0xff]  ;;  %s2651_s30 = smov (!%p271_p3, %s1661_s30), 63  ;;  %vm325_vm0 = vcmask 261120   ;;  %vm1567_vm1 = vcmask 64512  }
   0xc   : > { %1906 = vmatprep.subr.mxu0 %v317_v0  ;;  %2074 = vmatprep.subr.mxu1 %v317_v0  ;;  %v314_v3 = vld [vmem:[%s2643_s1] sm:$0xff]  ;;  %s1662_s12 = sshll.u32 %s2651_s30, 3  ;;  %v682_v4 = vld [vmem:[%s2645_s3 + $0x18] sm:$0xff]  ;;  %v681_v13 = vld [vmem:[%s2645_s3 + $0x10] sm:$0xff] }
   0xd   : > { %1907 = vmatpush3.msra.mxu0 %v317_v0  ;;  %2078 = vmatpush3.msra.mxu1 %v317_v0  ;;  %s2294_s15 = scalar_lea.vmem %s2642_s0, %s1662_s12  ;;  %v680_v18 = vld [vmem:[%s2645_s3 + $0x8] sm:$0xff]  ;;  %v679_v20 = vld [vmem:[%s2645_s3] sm:$0xff]  ;;  %v1046_v40 = vld [vmem:[%s2647_s5 + $0x18] sm:$0xff]  ;;  %s2557_s20 = scalar_lea.vmem %s2649_s7, %s1662_s12 }
   0xe   : > { %1908 = vmatprep.subr.mxu0 %v316_v1  ;;  %2075 = vmatprep.subr.mxu1 %v316_v1  ;;  %v282_v5 = vld [vmem:[%s2294_s15] sm:$0xff]  ;;  %v283_v6 = vld [vmem:[%s2294_s15 + $0x8] sm:$0xff]  ;;  %v284_v7 = vld [vmem:[%s2294_s15 + $0x10] sm:$0xff] }
   0xf   : > { %1909 = vmatpush3.msra.mxu0 %v316_v1  ;;  %2079 = vmatpush3.msra.mxu1 %v316_v1  ;;  %v285_v8 = vld [vmem:[%s2294_s15 + $0x18] sm:$0xff]  ;;  %v286_v9 = vld [vmem:[%s2294_s15 + $0x20] sm:$0xff]  ;;  %v299_v11 = vld [vmem:[%s2294_s15 + $0x88] sm:$0xff] }
  0x10   : > { %1910 = vmatprep.subr.mxu0 %v315_v2  ;;  %2076 = vmatprep.subr.mxu1 %v315_v2  ;;  %v298_v10 = vld [vmem:[%s2294_s15 + $0x80] sm:$0xff]  ;;  %v300_v12 = vld [vmem:[%s2294_s15 + $0x90] sm:$0xff]  ;;  %v287_v14 = vld [vmem:[%s2294_s15 + $0x28] sm:$0xff] }
  0x11   : > { %1911 = vmatpush3.msra.mxu0 %v315_v2  ;;  %2080 = vmatpush3.msra.mxu1 %v315_v2  ;;  %v288_v15 = vld [vmem:[%s2294_s15 + $0x30] sm:$0xff]  ;;  %v301_v16 = vld [vmem:[%s2294_s15 + $0x98] sm:$0xff]  ;;  %v302_v17 = vld [vmem:[%s2294_s15 + $0xa0] sm:$0xff] }
  0x12   : > { %1912 = vmatprep.subr.mxu0 %v314_v3  ;;  %2077 = vmatprep.subr.mxu1 %v314_v3  ;;  %v289_v19 = vld [vmem:[%s2294_s15 + $0x38] sm:$0xff]  ;;  %v290_v21 = vld [vmem:[%s2294_s15 + $0x40] sm:$0xff]  ;;  %v303_v22 = vld [vmem:[%s2294_s15 + $0xa8] sm:$0xff] }
  0x13   : > { %1913 = vmatpush3.msra.mxu0 %v314_v3  ;;  %1914 = vmatprep.mubr.msk.f32.mxu0 %vm325_vm0, %v282_v5  ;;  %v304_v23 = vld [vmem:[%s2294_s15 + $0xb0] sm:$0xff]  ;;  %v291_v24 = vld [vmem:[%s2294_s15 + $0x48] sm:$0xff]  ;;  %v305_v26 = vld [vmem:[%s2294_s15 + $0xb8] sm:$0xff] }
  0x14   : > { %1915 = vmatmul.mubr.msk.f32.vlgmr.msra.gmra.mxu0 %vm325_vm0, %v283_v6  ;;  %2081 = vmatpush3.msra.mxu1 %v314_v3  ;;  %v292_v25 = vld [vmem:[%s2294_s15 + $0x50] sm:$0xff]  ;;  %v306_v27 = vld [vmem:[%s2294_s15 + $0xc0] sm:$0xff]  ;;  %v293_v28 = vld [vmem:[%s2294_s15 + $0x58] sm:$0xff] }
  0x15   : > { %1917 = vmatprep.mubr.msk.f32.mxu0 %vm325_vm0, %v284_v7  ;;  %1962 = vmatprep.subr.mxu1 %v682_v4  ;;  %v294_v29 = vld [vmem:[%s2294_s15 + $0x60] sm:$0xff]  ;;  %v307_v30 = vld [vmem:[%s2294_s15 + $0xc8] sm:$0xff]  ;;  %v308_v31 = vld [vmem:[%s2294_s15 + $0xd0] sm:$0xff] }
  0x16   : > { %1938 = vmatprep.mubr.msk.f32.mxu1 %vm325_vm0, %v298_v10  ;;  %v295_v32 = vld [vmem:[%s2294_s15 + $0x68] sm:$0xff]  ;;  %v296_v33 = vld [vmem:[%s2294_s15 + $0x70] sm:$0xff]  ;;  %v309_v34 = vld [vmem:[%s2294_s15 + $0xd8] sm:$0xff]  ;;  %2018 = vmatprep.subr.mxu0 %v1046_v40 }
  0x17   : > { %1939 = vmatmul.mubr.msk.f32.vlgmr.msra.gmra.mxu1 %vm325_vm0, %v299_v11  ;;  %v310_v35 = vld [vmem:[%s2294_s15 + $0xe0] sm:$0xff]  ;;  %v297_v36 = vld [vmem:[%s2294_s15 + $0x78] sm:$0xff]  ;;  %v311_v37 = vld [vmem:[%s2294_s15 + $0xe8] sm:$0xff]  ;;  %2019 = vmatpush3.msra.mxu0 %v1046_v40 }
  0x18   : > { %1918 = vmatmul.mubr.msk.f32.gmra.mxu0 %vm325_vm0, %v285_v8  ;;  %1941 = vmatprep.mubr.msk.f32.mxu1 %vm325_vm0, %v300_v12  ;;  %v312_v38 = vld [vmem:[%s2294_s15 + $0xf0] sm:$0xff]  ;;  %v313_v39 = vld [vmem:[%s2294_s15 + $0xf8] sm:$0xff]  ;;  %v1044_v42 = vld [vmem:[%s2647_s5 + $0x8] sm:$0xff] }
  0x19   : > { %1920 = vmatprep.mubr.msk.f32.mxu0 %vm325_vm0, %v286_v9  ;;  %1963 = vmatpush3.msra.mxu1 %v682_v4  ;;  %v1045_v41 = vld [vmem:[%s2647_s5 + $0x10] sm:$0xff]  ;;  %v1043_v43 = vld [vmem:[%s2647_s5] sm:$0xff] }
  0x1a   : > { %1964 = vmatprep.subr.mxu1 %v681_v13  ;;  %2020 = vmatprep.subr.mxu0 %v1045_v41  ;;  %v2387_v44 = vld [vmem:[%s2644_s2] ss:$0 sm:$0xff] }
  0x1b   : > { %1965 = vmatpush3.msra.mxu1 %v681_v13  ;;  %2021 = vmatpush3.msra.mxu0 %v1045_v41 }
  0x1c   : > { %1921 = vmatmul.mubr.msk.f32.gmra.mxu0 %vm325_vm0, %v287_v14  ;;  %1942 = vmatmul.mubr.msk.f32.gmra.mxu1 %vm325_vm0, %v301_v16 }
  0x1d   : > { %1923 = vmatprep.mubr.msk.f32.mxu0 %vm325_vm0, %v288_v15  ;;  %1944 = vmatprep.mubr.msk.f32.mxu1 %vm325_vm0, %v302_v17 }
  0x1e   : > { %1966 = vmatprep.subr.mxu1 %v680_v18  ;;  %2022 = vmatprep.subr.mxu0 %v1044_v42 }
  0x1f   : > { %1967 = vmatpush3.msra.mxu1 %v680_v18  ;;  %2023 = vmatpush3.msra.mxu0 %v1044_v42 }
  0x20   : > { %1924 = vmatmul.mubr.msk.f32.gmra.mxu0 %vm325_vm0, %v289_v19  ;;  %1968 = vmatprep.subr.mxu1 %v679_v20 }
  0x21   : > { %1926 = vmatprep.mubr.msk.f32.mxu0 %vm325_vm0, %v290_v21  ;;  %1945 = vmatmul.mubr.msk.f32.gmra.mxu1 %vm325_vm0, %v303_v22 }
  0x22   : > { %1947 = vmatprep.mubr.msk.f32.mxu1 %vm325_vm0, %v304_v23  ;;  %1969 = vmatpush3.msra.mxu1 %v679_v20 }
  0x23   : > { %2024 = vmatprep.subr.mxu0 %v1043_v43 }
  0x24   : > { %1927 = vmatmul.mubr.msk.f32.gmra.mxu0 %vm325_vm0, %v291_v24 }
  0x25   : > { %1929 = vmatprep.mubr.msk.f32.mxu0 %vm325_vm0, %v292_v25  ;;  %1948 = vmatmul.mubr.msk.f32.gmra.mxu1 %vm325_vm0, %v305_v26 }
  0x26   : > { %1950 = vmatprep.mubr.msk.f32.mxu1 %vm325_vm0, %v306_v27  ;;  %2025 = vmatpush3.msra.mxu0 %v1043_v43 }
  0x28   : > { %1930 = vmatmul.mubr.msk.f32.gmra.mxu0 %vm325_vm0, %v293_v28 }
  0x29   : > { %1932 = vmatprep.mubr.msk.f32.mxu0 %vm325_vm0, %v294_v29  ;;  %1951 = vmatmul.mubr.msk.f32.gmra.mxu1 %vm325_vm0, %v307_v30 }
  0x2a   : > { %1953 = vmatprep.mubr.msk.f32.mxu1 %vm325_vm0, %v308_v31 }
  0x2c   : > { %1933 = vmatmul.mubr.msk.f32.gmra.mxu0 %vm325_vm0, %v295_v32 }
  0x2d   : > { %1935 = vmatprep.mubr.msk.f32.mxu0 %vm325_vm0, %v296_v33  ;;  %1954 = vmatmul.mubr.msk.f32.gmra.mxu1 %vm325_vm0, %v309_v34 }
  0x2e   : > { %1956 = vmatprep.mubr.msk.f32.mxu1 %vm325_vm0, %v310_v35 }
  0x30   : > { %1936 = vmatmul.mubr.msk.f32.gmra.mxu0 %vm325_vm0, %v297_v36 }
  0x31   : > { %1957 = vmatmul.mubr.msk.f32.gmra.mxu1 %vm325_vm0, %v311_v37 }
  0x32   : > { %1959 = vmatprep.mubr.msk.f32.mxu1 %vm325_vm0, %v312_v38 }
  0x35   : > { %1960 = vmatmul.mubr.msk.f32.gmra.mxu1 %vm325_vm0, %v313_v39 }
  0xd4   : > { %v1916_v45 = vpop.f32.mrf.mxu0 }
  0xd5   : > { %v494_v46 = vadd.f32 %v1916_v45, %v2387_v44 }
  0xd6   : > { %v488_v47 = vpop.f32.mrf.mxu0 }
  0xd7   : > { %v489_v48 = vadd.f32 %v2387_v44, %v488_v47  ;;  %v2391_v51 = vpop.f32.mrf.mxu1  ;;  %v648_v52 = vmax.f32 %v494_v46, 0.0 }
  0xd8   : > { %v1919_v49 = vpop.f32.mrf.mxu0  ;;  %v574_v42 = vadd.f32 %v2391_v51, %v2387_v44 }
  0xd9   : > { %v647_v50 = vmax.f32 %v489_v48, 0.0  ;;  %v504_v53 = vadd.f32 %v1919_v49, %v2387_v44  ;;  %v568_v56 = vpop.f32.mrf.mxu1 }
  0xda   : > { %v498_v54 = vpop.f32.mrf.mxu0  ;;  %v569_v32 = vadd.f32 %v2387_v44, %v568_v56  ;;  %v664_v47 = vmax.f32 %v574_v42, 0.0 }
  0xdb   : > { %v499_v55 = vadd.f32 %v2387_v44, %v498_v54  ;;  %1970 = vmatprep.mubr.msk.f32.mxu1 %vm325_vm0, %v647_v50  ;;  %v650_v60 = vmax.f32 %v504_v53, 0.0 }
  0xdc   : > { %v1922_v57 = vpop.f32.mrf.mxu0  ;;  %1971 = vmatmul.mubr.msk.f32.vlgmr.msra.gmra.mxu1 %vm325_vm0, %v648_v52  ;;  %v2397_v59 = vpop.f32.mrf.mxu1  ;;  %v663_v39 = vmax.f32 %v569_v32, 0.0 }
  0xdd   : > { %v649_v58 = vmax.f32 %v499_v55, 0.0  ;;  %v514_v61 = vadd.f32 %v1922_v57, %v2387_v44  ;;  %v584_v48 = vadd.f32 %v2397_v59, %v2387_v44 }
  0xde   : > { %v508_v62 = vpop.f32.mrf.mxu0  ;;  %v578_v0 = vpop.f32.mrf.mxu1 }
  0xdf   : > { %v509_v63 = vadd.f32 %v2387_v44, %v508_v62  ;;  %1973 = vmatprep.mubr.msk.f32.mxu1 %vm325_vm0, %v649_v58  ;;  %v652_v4 = vmax.f32 %v514_v61, 0.0  ;;  %v579_v40 = vadd.f32 %v2387_v44, %v578_v0  ;;  %v666_v52 = vmax.f32 %v584_v48, 0.0 }
  0xe0   : > { %v1925_v1 = vpop.f32.mrf.mxu0  ;;  %1974 = vmatmul.mubr.msk.f32.gmra.mxu1 %vm325_vm0, %v650_v60 }
  0xe1   : > { %v651_v2 = vmax.f32 %v509_v63, 0.0  ;;  %v2403_v3 = vpop.f32.mrf.mxu1  ;;  %v524_v5 = vadd.f32 %v1925_v1, %v2387_v44  ;;  %v665_v45 = vmax.f32 %v579_v40, 0.0 }
  0xe2   : > { %v518_v6 = vpop.f32.mrf.mxu0  ;;  %v594_v53 = vadd.f32 %v2403_v3, %v2387_v44 }
  0xe3   : > { %v519_v7 = vadd.f32 %v2387_v44, %v518_v6  ;;  %1976 = vmatprep.mubr.msk.f32.mxu1 %vm325_vm0, %v651_v2  ;;  %v588_v8 = vpop.f32.mrf.mxu1  ;;  %v654_v11 = vmax.f32 %v524_v5, 0.0 }
  0xe4   : > { %v1928_v9 = vpop.f32.mrf.mxu0  ;;  %1977 = vmatmul.mubr.msk.f32.gmra.mxu1 %vm325_vm0, %v652_v4  ;;  %v589_v46 = vadd.f32 %v2387_v44, %v588_v8  ;;  %v668_v57 = vmax.f32 %v594_v53, 0.0 }
  0xe5   : > { %v653_v10 = vmax.f32 %v519_v7, 0.0  ;;  %v534_v12 = vadd.f32 %v1928_v9, %v2387_v44  ;;  %v1949_v14 = vpop.f32.mrf.mxu1 }
  0xe6   : > { %v528_v13 = vpop.f32.mrf.mxu0  ;;  %v667_v50 = vmax.f32 %v589_v46, 0.0  ;;  %v604_v58 = vadd.f32 %v1949_v14, %v2387_v44  ;;  %v2465_v14 = vld [vmem:[%s2646_s4] ss:$0 sm:$0xff] }
  0xe7   : > { %v529_v15 = vadd.f32 %v2387_v44, %v528_v13  ;;  %1979 = vmatprep.mubr.msk.f32.mxu1 %vm325_vm0, %v653_v10  ;;  %v656_v18 = vmax.f32 %v534_v12, 0.0  ;;  %v598_v21 = vpop.f32.mrf.mxu1 }
  0xe8   : > { %v1931_v16 = vpop.f32.mrf.mxu0  ;;  %1980 = vmatmul.mubr.msk.f32.gmra.mxu1 %vm325_vm0, %v654_v11  ;;  %v599_v51 = vadd.f32 %v2387_v44, %v598_v21  ;;  %v670_v62 = vmax.f32 %v604_v58, 0.0 }
  0xe9   : > { %v655_v17 = vmax.f32 %v529_v15, 0.0  ;;  %v544_v19 = vadd.f32 %v1931_v16, %v2387_v44  ;;  %v1952_v28 = vpop.f32.mrf.mxu1 }
  0xea   : > { %v538_v20 = vpop.f32.mrf.mxu0  ;;  %v669_v55 = vmax.f32 %v599_v51, 0.0  ;;  %v614_v63 = vadd.f32 %v1952_v28, %v2387_v44 }
  0xeb   : > { %v539_v22 = vadd.f32 %v2387_v44, %v538_v20  ;;  %1982 = vmatprep.mubr.msk.f32.mxu1 %vm325_vm0, %v655_v17  ;;  %v658_v25 = vmax.f32 %v544_v19, 0.0  ;;  %v608_v36 = vpop.f32.mrf.mxu1 }
  0xec   : > { %v1934_v23 = vpop.f32.mrf.mxu0  ;;  %1983 = vmatmul.mubr.msk.f32.gmra.mxu1 %vm325_vm0, %v656_v18  ;;  %v609_v56 = vadd.f32 %v2387_v44, %v608_v36  ;;  %v672_v3 = vmax.f32 %v614_v63, 0.0 }
  0xed   : > { %v657_v24 = vmax.f32 %v539_v22, 0.0  ;;  %v554_v26 = vadd.f32 %v1934_v23, %v2387_v44  ;;  %v1955_v43 = vpop.f32.mrf.mxu1 }
  0xee   : > { %v548_v27 = vpop.f32.mrf.mxu0  ;;  %v671_v60 = vmax.f32 %v609_v56, 0.0  ;;  %v624_v4 = vadd.f32 %v1955_v43, %v2387_v44 }
  0xef   : > { %v549_v29 = vadd.f32 %v2387_v44, %v548_v27  ;;  %1985 = vmatprep.mubr.msk.f32.mxu1 %vm325_vm0, %v657_v24  ;;  %v660_v33 = vmax.f32 %v554_v26, 0.0  ;;  %v618_v49 = vpop.f32.mrf.mxu1 }
  0xf0   : > { %v1937_v30 = vpop.f32.mrf.mxu0  ;;  %1986 = vmatmul.mubr.msk.f32.gmra.mxu1 %vm325_vm0, %v658_v25  ;;  %v619_v61 = vadd.f32 %v2387_v44, %v618_v49  ;;  %v674_v8 = vmax.f32 %v624_v4, 0.0 }
  0xf1   : > { %v659_v31 = vmax.f32 %v549_v29, 0.0  ;;  %v564_v34 = vadd.f32 %v1937_v30, %v2387_v44  ;;  %v1958_v54 = vpop.f32.mrf.mxu1 }
  0xf2   : > { %v558_v35 = vpop.f32.mrf.mxu0  ;;  %v673_v1 = vmax.f32 %v619_v61, 0.0  ;;  %v634_v9 = vadd.f32 %v1958_v54, %v2387_v44 }
  0xf3   : > { %v559_v37 = vadd.f32 %v2387_v44, %v558_v35  ;;  %1988 = vmatprep.mubr.msk.f32.mxu1 %vm325_vm0, %v659_v31  ;;  %v662_v41 = vmax.f32 %v564_v34, 0.0  ;;  %v628_v59 = vpop.f32.mrf.mxu1 }
  0xf4   : > { %1989 = vmatmul.mubr.msk.f32.gmra.mxu1 %vm325_vm0, %v660_v33  ;;  %v629_v2 = vadd.f32 %v2387_v44, %v628_v59  ;;  %v676_v11 = vmax.f32 %v634_v9, 0.0 }
  0xf5   : > { %v661_v38 = vmax.f32 %v559_v37, 0.0  ;;  %v1961_v0 = vpop.f32.mrf.mxu1 }
  0xf6   : > { %v675_v6 = vmax.f32 %v629_v2, 0.0  ;;  %v644_v12 = vadd.f32 %v1961_v0, %v2387_v44 }
  0xf7   : > { %1991 = vmatprep.mubr.msk.f32.mxu1 %vm325_vm0, %v661_v38  ;;  %v638_v5 = vpop.f32.mrf.mxu1 }
  0xf8   : > { %1992 = vmatmul.mubr.msk.f32.gmra.mxu1 %vm325_vm0, %v662_v41  ;;  %v639_v7 = vadd.f32 %v2387_v44, %v638_v5  ;;  %v678_v13 = vmax.f32 %v644_v12, 0.0 }
  0xf9   : > { %1994 = vmatprep.mubr.msk.f32.mxu1 %vm325_vm0, %v663_v39 }
  0xfa   : > { %v677_v10 = vmax.f32 %v639_v7, 0.0 }
  0xfc   : > { %1995 = vmatmul.mubr.msk.f32.gmra.mxu1 %vm325_vm0, %v664_v47 }
  0xfd   : > { %1997 = vmatprep.mubr.msk.f32.mxu1 %vm325_vm0, %v665_v45 }
 0x100   : > { %1998 = vmatmul.mubr.msk.f32.gmra.mxu1 %vm325_vm0, %v666_v52 }
 0x101   : > { %2000 = vmatprep.mubr.msk.f32.mxu1 %vm325_vm0, %v667_v50 }
 0x104   : > { %2001 = vmatmul.mubr.msk.f32.gmra.mxu1 %vm325_vm0, %v668_v57 }
 0x105   : > { %2003 = vmatprep.mubr.msk.f32.mxu1 %vm325_vm0, %v669_v55 }
 0x108   : > { %2004 = vmatmul.mubr.msk.f32.gmra.mxu1 %vm325_vm0, %v670_v62 }
 0x109   : > { %2006 = vmatprep.mubr.msk.f32.mxu1 %vm325_vm0, %v671_v60 }
 0x10c   : > { %2007 = vmatmul.mubr.msk.f32.gmra.mxu1 %vm325_vm0, %v672_v3 }
 0x10d   : > { %2009 = vmatprep.mubr.msk.f32.mxu1 %vm325_vm0, %v673_v1 }
 0x110   : > { %2010 = vmatmul.mubr.msk.f32.gmra.mxu1 %vm325_vm0, %v674_v8 }
 0x111   : > { %2012 = vmatprep.mubr.msk.f32.mxu1 %vm325_vm0, %v675_v6 }
 0x114   : > { %2013 = vmatmul.mubr.msk.f32.gmra.mxu1 %vm325_vm0, %v676_v11 }
 0x115   : > { %2015 = vmatprep.mubr.msk.f32.mxu1 %vm325_vm0, %v677_v10 }
 0x118   : > { %2016 = vmatmul.mubr.msk.f32.gmra.mxu1 %vm325_vm0, %v678_v13 }
 0x19c   : > { %v1972_v15 = vpop.f32.mrf.mxu1 }
 0x19d   : > { %v858_v16 = vadd.f32 %v1972_v15, %v2465_v14 }
 0x19e   : > { %v852_v17 = vpop.f32.mrf.mxu1 }
 0x19f   : > { %v853_v18 = vadd.f32 %v2465_v14, %v852_v17  ;;  %v1012_v20 = vmax.f32 %v858_v16, 0.0 }
 0x1a0   : > { %v1975_v19 = vpop.f32.mrf.mxu1 }
 0x1a1   : > { %v1011_v44 = vmax.f32 %v853_v18, 0.0  ;;  %v868_v21 = vadd.f32 %v1975_v19, %v2465_v14 }
 0x1a2   : > { %v862_v22 = vpop.f32.mrf.mxu1 }
 0x1a3   : > { %v863_v23 = vadd.f32 %v2465_v14, %v862_v22  ;;  %2026 = vmatprep.mubr.msk.f32.mxu0 %vm325_vm0, %v1011_v44  ;;  %v1014_v26 = vmax.f32 %v868_v21, 0.0 }
 0x1a4   : > { %v1978_v24 = vpop.f32.mrf.mxu1  ;;  %2027 = vmatmul.mubr.msk.f32.vlgmr.msra.gmra.mxu0 %vm325_vm0, %v1012_v20 }
 0x1a5   : > { %v1013_v25 = vmax.f32 %v863_v23, 0.0  ;;  %v878_v27 = vadd.f32 %v1978_v24, %v2465_v14 }
 0x1a6   : > { %v872_v28 = vpop.f32.mrf.mxu1 }
 0x1a7   : > { %v873_v29 = vadd.f32 %v2465_v14, %v872_v28  ;;  %2029 = vmatprep.mubr.msk.f32.mxu0 %vm325_vm0, %v1013_v25  ;;  %v1016_v32 = vmax.f32 %v878_v27, 0.0 }
 0x1a8   : > { %v1981_v30 = vpop.f32.mrf.mxu1  ;;  %2030 = vmatmul.mubr.msk.f32.gmra.mxu0 %vm325_vm0, %v1014_v26 }
 0x1a9   : > { %v1015_v31 = vmax.f32 %v873_v29, 0.0  ;;  %v888_v33 = vadd.f32 %v1981_v30, %v2465_v14 }
 0x1aa   : > { %v882_v34 = vpop.f32.mrf.mxu1 }
 0x1ab   : > { %v883_v35 = vadd.f32 %v2465_v14, %v882_v34  ;;  %2032 = vmatprep.mubr.msk.f32.mxu0 %vm325_vm0, %v1015_v31  ;;  %v1018_v38 = vmax.f32 %v888_v33, 0.0 }
 0x1ac   : > { %v1984_v36 = vpop.f32.mrf.mxu1  ;;  %2033 = vmatmul.mubr.msk.f32.gmra.mxu0 %vm325_vm0, %v1016_v32 }
 0x1ad   : > { %v1017_v37 = vmax.f32 %v883_v35, 0.0  ;;  %v898_v39 = vadd.f32 %v1984_v36, %v2465_v14 }
 0x1ae   : > { %v892_v40 = vpop.f32.mrf.mxu1 }
 0x1af   : > { %v893_v41 = vadd.f32 %v2465_v14, %v892_v40  ;;  %2035 = vmatprep.mubr.msk.f32.mxu0 %vm325_vm0, %v1017_v37  ;;  %v1020_v45 = vmax.f32 %v898_v39, 0.0 }
 0x1b0   : > { %v1987_v42 = vpop.f32.mrf.mxu1  ;;  %2036 = vmatmul.mubr.msk.f32.gmra.mxu0 %vm325_vm0, %v1018_v38 }
 0x1b1   : > { %v1019_v43 = vmax.f32 %v893_v41, 0.0  ;;  %v908_v46 = vadd.f32 %v1987_v42, %v2465_v14 }
 0x1b2   : > { %v902_v47 = vpop.f32.mrf.mxu1 }
 0x1b3   : > { %v903_v48 = vadd.f32 %v2465_v14, %v902_v47  ;;  %2038 = vmatprep.mubr.msk.f32.mxu0 %vm325_vm0, %v1019_v43  ;;  %v1022_v51 = vmax.f32 %v908_v46, 0.0 }
 0x1b4   : > { %v1990_v49 = vpop.f32.mrf.mxu1  ;;  %2039 = vmatmul.mubr.msk.f32.gmra.mxu0 %vm325_vm0, %v1020_v45 }
 0x1b5   : > { %v1021_v50 = vmax.f32 %v903_v48, 0.0  ;;  %v918_v52 = vadd.f32 %v1990_v49, %v2465_v14  ;;  %v2534_v48 = vld [vmem:[%s2648_s6] ss:$0 sm:$0xff] }
 0x1b6   : > { %v912_v53 = vpop.f32.mrf.mxu1 }
 0x1b7   : > { %v913_v54 = vadd.f32 %v2465_v14, %v912_v53  ;;  %2041 = vmatprep.mubr.msk.f32.mxu0 %vm325_vm0, %v1021_v50  ;;  %v1024_v57 = vmax.f32 %v918_v52, 0.0 }
 0x1b8   : > { %v1993_v55 = vpop.f32.mrf.mxu1  ;;  %2042 = vmatmul.mubr.msk.f32.gmra.mxu0 %vm325_vm0, %v1022_v51 }
 0x1b9   : > { %v1023_v56 = vmax.f32 %v913_v54, 0.0  ;;  %v928_v58 = vadd.f32 %v1993_v55, %v2465_v14 }
 0x1ba   : > { %v922_v59 = vpop.f32.mrf.mxu1 }
 0x1bb   : > { %v923_v60 = vadd.f32 %v2465_v14, %v922_v59  ;;  %2044 = vmatprep.mubr.msk.f32.mxu0 %vm325_vm0, %v1023_v56  ;;  %v1026_v63 = vmax.f32 %v928_v58, 0.0 }
 0x1bc   : > { %v1996_v61 = vpop.f32.mrf.mxu1  ;;  %2045 = vmatmul.mubr.msk.f32.gmra.mxu0 %vm325_vm0, %v1024_v57 }
 0x1bd   : > { %v1025_v62 = vmax.f32 %v923_v60, 0.0  ;;  %v938_v0 = vadd.f32 %v1996_v61, %v2465_v14 }
 0x1be   : > { %v932_v1 = vpop.f32.mrf.mxu1 }
 0x1bf   : > { %v933_v2 = vadd.f32 %v2465_v14, %v932_v1  ;;  %2047 = vmatprep.mubr.msk.f32.mxu0 %vm325_vm0, %v1025_v62  ;;  %v1028_v5 = vmax.f32 %v938_v0, 0.0 }
 0x1c0   : > { %v1999_v3 = vpop.f32.mrf.mxu1  ;;  %2048 = vmatmul.mubr.msk.f32.gmra.mxu0 %vm325_vm0, %v1026_v63 }
 0x1c1   : > { %v1027_v4 = vmax.f32 %v933_v2, 0.0  ;;  %v948_v6 = vadd.f32 %v1999_v3, %v2465_v14 }
 0x1c2   : > { %v942_v7 = vpop.f32.mrf.mxu1 }
 0x1c3   : > { %v943_v8 = vadd.f32 %v2465_v14, %v942_v7  ;;  %2050 = vmatprep.mubr.msk.f32.mxu0 %vm325_vm0, %v1027_v4  ;;  %v1030_v11 = vmax.f32 %v948_v6, 0.0 }
 0x1c4   : > { %v2002_v9 = vpop.f32.mrf.mxu1  ;;  %2051 = vmatmul.mubr.msk.f32.gmra.mxu0 %vm325_vm0, %v1028_v5 }
 0x1c5   : > { %v1029_v10 = vmax.f32 %v943_v8, 0.0  ;;  %v958_v12 = vadd.f32 %v2002_v9, %v2465_v14 }
 0x1c6   : > { %v952_v13 = vpop.f32.mrf.mxu1 }
 0x1c7   : > { %v953_v15 = vadd.f32 %v2465_v14, %v952_v13  ;;  %2053 = vmatprep.mubr.msk.f32.mxu0 %vm325_vm0, %v1029_v10  ;;  %v1032_v18 = vmax.f32 %v958_v12, 0.0 }
 0x1c8   : > { %v2005_v16 = vpop.f32.mrf.mxu1  ;;  %2054 = vmatmul.mubr.msk.f32.gmra.mxu0 %vm325_vm0, %v1030_v11 }
 0x1c9   : > { %v1031_v17 = vmax.f32 %v953_v15, 0.0  ;;  %v968_v19 = vadd.f32 %v2005_v16, %v2465_v14 }
 0x1ca   : > { %v962_v44 = vpop.f32.mrf.mxu1 }
 0x1cb   : > { %v963_v20 = vadd.f32 %v2465_v14, %v962_v44  ;;  %2056 = vmatprep.mubr.msk.f32.mxu0 %vm325_vm0, %v1031_v17  ;;  %v1034_v23 = vmax.f32 %v968_v19, 0.0 }
 0x1cc   : > { %v2008_v21 = vpop.f32.mrf.mxu1  ;;  %2057 = vmatmul.mubr.msk.f32.gmra.mxu0 %vm325_vm0, %v1032_v18 }
 0x1cd   : > { %v1033_v22 = vmax.f32 %v963_v20, 0.0  ;;  %v978_v24 = vadd.f32 %v2008_v21, %v2465_v14 }
 0x1ce   : > { %v972_v25 = vpop.f32.mrf.mxu1 }
 0x1cf   : > { %v973_v26 = vadd.f32 %v2465_v14, %v972_v25  ;;  %2059 = vmatprep.mubr.msk.f32.mxu0 %vm325_vm0, %v1033_v22  ;;  %v1036_v29 = vmax.f32 %v978_v24, 0.0 }
 0x1d0   : > { %v2011_v27 = vpop.f32.mrf.mxu1  ;;  %2060 = vmatmul.mubr.msk.f32.gmra.mxu0 %vm325_vm0, %v1034_v23 }
 0x1d1   : > { %v1035_v28 = vmax.f32 %v973_v26, 0.0  ;;  %v988_v30 = vadd.f32 %v2011_v27, %v2465_v14 }
 0x1d2   : > { %v982_v31 = vpop.f32.mrf.mxu1 }
 0x1d3   : > { %v983_v32 = vadd.f32 %v2465_v14, %v982_v31  ;;  %2062 = vmatprep.mubr.msk.f32.mxu0 %vm325_vm0, %v1035_v28  ;;  %v1038_v35 = vmax.f32 %v988_v30, 0.0 }
 0x1d4   : > { %v2014_v33 = vpop.f32.mrf.mxu1  ;;  %2063 = vmatmul.mubr.msk.f32.gmra.mxu0 %vm325_vm0, %v1036_v29 }
 0x1d5   : > { %v1037_v34 = vmax.f32 %v983_v32, 0.0  ;;  %v998_v36 = vadd.f32 %v2014_v33, %v2465_v14 }
 0x1d6   : > { %v992_v37 = vpop.f32.mrf.mxu1 }
 0x1d7   : > { %v993_v38 = vadd.f32 %v2465_v14, %v992_v37  ;;  %2065 = vmatprep.mubr.msk.f32.mxu0 %vm325_vm0, %v1037_v34  ;;  %v1040_v41 = vmax.f32 %v998_v36, 0.0 }
 0x1d8   : > { %v2017_v39 = vpop.f32.mrf.mxu1  ;;  %2066 = vmatmul.mubr.msk.f32.gmra.mxu0 %vm325_vm0, %v1038_v35 }
 0x1d9   : > { %v1039_v40 = vmax.f32 %v993_v38, 0.0  ;;  %v1008_v42 = vadd.f32 %v2017_v39, %v2465_v14 }
 0x1da   : > { %v1002_v43 = vpop.f32.mrf.mxu1 }
 0x1db   : > { %v1003_v45 = vadd.f32 %v2465_v14, %v1002_v43  ;;  %2068 = vmatprep.mubr.msk.f32.mxu0 %vm325_vm0, %v1039_v40  ;;  %v1042_v47 = vmax.f32 %v1008_v42, 0.0 }
 0x1dc   : > { %2069 = vmatmul.mubr.msk.f32.gmra.mxu0 %vm325_vm0, %v1040_v41 }
 0x1dd   : > { %v1041_v46 = vmax.f32 %v1003_v45, 0.0 }
 0x1df   : > { %2071 = vmatprep.mubr.msk.f32.mxu0 %vm325_vm0, %v1041_v46 }
 0x1e0   : > { %2072 = vmatmul.mubr.msk.f32.gmra.mxu0 %vm325_vm0, %v1042_v47 }
 0x264   : > { %v2028_v49 = vpop.f32.mrf.mxu0 }
 0x265   : > { %v1222_v50 = vadd.f32 %v2028_v49, %v2534_v48 }
 0x266   : > { %v1216_v51 = vpop.f32.mrf.mxu0 }
 0x267   : > { %v1765_v14 = vmul.f32 -1.442695, %v1222_v50  ;;  %v1217_v52 = vadd.f32 %v2534_v48, %v1216_v51 }
 0x268   : > { %v2031_v53 = vpop.f32.mrf.mxu0 }
 0x269   : > { %2090 = vpow2.f32 %v1765_v14  ;;  %v1764_v54 = vmul.f32 -1.442695, %v1217_v52  ;;  %v1232_v55 = vadd.f32 %v2031_v53, %v2534_v48 }
 0x26a   : > { %v1226_v56 = vpop.f32.mrf.mxu0 }
 0x26b   : > { %2092 = vpow2.f32 %v1764_v54  ;;  %v1767_v57 = vmul.f32 -1.442695, %v1232_v55  ;;  %v1227_v58 = vadd.f32 %v2534_v48, %v1226_v56 }
 0x26c   : > { %v2034_v59 = vpop.f32.mrf.mxu0 }
 0x26d   : > { %2094 = vpow2.f32 %v1767_v57  ;;  %v1766_v60 = vmul.f32 -1.442695, %v1227_v58  ;;  %v1242_v61 = vadd.f32 %v2034_v59, %v2534_v48 }
 0x26e   : > { %v1236_v62 = vpop.f32.mrf.mxu0 }
 0x26f   : > { %2096 = vpow2.f32 %v1766_v60  ;;  %v1769_v63 = vmul.f32 -1.442695, %v1242_v61  ;;  %v1237_v0 = vadd.f32 %v2534_v48, %v1236_v62 }
 0x270   : > { %v2037_v1 = vpop.f32.mrf.mxu0 }
 0x271   : > { %2098 = vpow2.f32 %v1769_v63  ;;  %v1768_v2 = vmul.f32 -1.442695, %v1237_v0  ;;  %v1252_v3 = vadd.f32 %v2037_v1, %v2534_v48 }
 0x272   : > { %v1246_v4 = vpop.f32.mrf.mxu0 }
 0x273   : > { %2100 = vpow2.f32 %v1768_v2  ;;  %v1771_v5 = vmul.f32 -1.442695, %v1252_v3  ;;  %v1247_v6 = vadd.f32 %v2534_v48, %v1246_v4 }
 0x274   : > { %v2040_v7 = vpop.f32.mrf.mxu0 }
 0x275   : > { %2102 = vpow2.f32 %v1771_v5  ;;  %v1770_v8 = vmul.f32 -1.442695, %v1247_v6  ;;  %v1262_v9 = vadd.f32 %v2040_v7, %v2534_v48 }
 0x276   : > { %v2091_v10 = vpop.eup %2090  ;;  %v1256_v11 = vpop.f32.mrf.mxu0 }
 0x277   : > { %v1472_v12 = vadd.f32 1.0, %v2091_v10  ;;  %2104 = vpow2.f32 %v1770_v8  ;;  %v1773_v13 = vmul.f32 -1.442695, %v1262_v9  ;;  %v1257_v15 = vadd.f32 %v2534_v48, %v1256_v11 }
 0x278   : > { %v2093_v16 = vpop.eup %2092  ;;  %v2043_v17 = vpop.f32.mrf.mxu0 }
 0x279   : > { %2106 = vrcp.f32 %v1472_v12  ;;  %v1471_v18 = vadd.f32 1.0, %v2093_v16  ;;  %v1772_v19 = vmul.f32 -1.442695, %v1257_v15  ;;  %v1272_v44 = vadd.f32 %v2043_v17, %v2534_v48 }
 0x27a   : > { %v2095_v20 = vpop.eup %2094  ;;  %2108 = vpow2.f32 %v1773_v13  ;;  %v1266_v21 = vpop.f32.mrf.mxu0 }
 0x27b   : > { %2110 = vrcp.f32 %v1471_v18  ;;  %v1474_v22 = vadd.f32 1.0, %v2095_v20  ;;  %v1775_v23 = vmul.f32 -1.442695, %v1272_v44  ;;  %v1267_v24 = vadd.f32 %v2534_v48, %v1266_v21 }
 0x27c   : > { %v2097_v25 = vpop.eup %2096  ;;  %2112 = vpow2.f32 %v1772_v19  ;;  %v2046_v26 = vpop.f32.mrf.mxu0 }
 0x27d   : > { %2114 = vrcp.f32 %v1474_v22  ;;  %v1473_v27 = vadd.f32 1.0, %v2097_v25  ;;  %v1774_v28 = vmul.f32 -1.442695, %v1267_v24  ;;  %v1282_v29 = vadd.f32 %v2046_v26, %v2534_v48 }
 0x27e   : > { %v2099_v30 = vpop.eup %2098  ;;  %2116 = vpow2.f32 %v1775_v23  ;;  %v1276_v31 = vpop.f32.mrf.mxu0 }
 0x27f   : > { %2118 = vrcp.f32 %v1473_v27  ;;  %v1476_v32 = vadd.f32 1.0, %v2099_v30  ;;  %v1777_v33 = vmul.f32 -1.442695, %v1282_v29  ;;  %v1277_v34 = vadd.f32 %v2534_v48, %v1276_v31 }
 0x280   : > { %v2101_v35 = vpop.eup %2100  ;;  %2120 = vpow2.f32 %v1774_v28  ;;  %v2049_v36 = vpop.f32.mrf.mxu0 }
 0x281   : > { %2122 = vrcp.f32 %v1476_v32  ;;  %v1475_v37 = vadd.f32 1.0, %v2101_v35  ;;  %v1776_v38 = vmul.f32 -1.442695, %v1277_v34  ;;  %v1292_v39 = vadd.f32 %v2049_v36, %v2534_v48 }
 0x282   : > { %v2103_v40 = vpop.eup %2102  ;;  %2124 = vpow2.f32 %v1777_v33  ;;  %v1286_v41 = vpop.f32.mrf.mxu0 }
 0x283   : > { %2126 = vrcp.f32 %v1475_v37  ;;  %v1478_v42 = vadd.f32 1.0, %v2103_v40  ;;  %v1779_v43 = vmul.f32 -1.442695, %v1292_v39  ;;  %v1287_v45 = vadd.f32 %v2534_v48, %v1286_v41 }
 0x284   : > { %v2105_v46 = vpop.eup %2104  ;;  %2128 = vpow2.f32 %v1776_v38  ;;  %v2052_v47 = vpop.f32.mrf.mxu0 }
 0x285   : > { %2130 = vrcp.f32 %v1478_v42  ;;  %v1477_v49 = vadd.f32 1.0, %v2105_v46  ;;  %v1778_v50 = vmul.f32 -1.442695, %v1287_v45  ;;  %v1302_v51 = vadd.f32 %v2052_v47, %v2534_v48 }
 0x286   : > { %v2107_v14 = vpop.eup %2106  ;;  %2132 = vpow2.f32 %v1779_v43  ;;  %v1296_v52 = vpop.f32.mrf.mxu0 }
 0x287   : > { %v2109_v53 = vpop.eup %2108  ;;  %1569 = vst.msk [vmem:[%s2557_s20 + $0x8] sm:$0xff] %vm1567_vm1, %v2107_v14  ;;  %2134 = vrcp.f32 %v1477_v49  ;;  %v1781_v54 = vmul.f32 -1.442695, %v1302_v51  ;;  %v1297_v55 = vadd.f32 %v2534_v48, %v1296_v52 }
 0x288   : > { %v2111_v56 = vpop.eup %2110  ;;  %v1480_v57 = vadd.f32 1.0, %v2109_v53  ;;  %2136 = vpow2.f32 %v1778_v50  ;;  %v2055_v58 = vpop.f32.mrf.mxu0 }
 0x289   : > { %v2113_v59 = vpop.eup %2112  ;;  %1568 = vst.msk [vmem:[%s2557_s20] sm:$0xff] %vm1567_vm1, %v2111_v56  ;;  %2138 = vpow2.f32 %v1781_v54  ;;  %v1780_v60 = vmul.f32 -1.442695, %v1297_v55  ;;  %v1312_v61 = vadd.f32 %v2055_v58, %v2534_v48 }
 0x28a   : > { %v2115_v62 = vpop.eup %2114  ;;  %2140 = vrcp.f32 %v1480_v57  ;;  %v1479_v63 = vadd.f32 1.0, %v2113_v59  ;;  %v1306_v0 = vpop.f32.mrf.mxu0 }
 0x28b   : > { %v2117_v1 = vpop.eup %2116  ;;  %1571 = vst.msk [vmem:[%s2557_s20 + $0x18] sm:$0xff] %vm1567_vm1, %v2115_v62  ;;  %2142 = vpow2.f32 %v1780_v60  ;;  %v1783_v2 = vmul.f32 -1.442695, %v1312_v61  ;;  %v1307_v3 = vadd.f32 %v2534_v48, %v1306_v0 }
 0x28c   : > { %v2119_v4 = vpop.eup %2118  ;;  %2144 = vrcp.f32 %v1479_v63  ;;  %v1482_v5 = vadd.f32 1.0, %v2117_v1  ;;  %v2058_v6 = vpop.f32.mrf.mxu0 }
 0x28d   : > { %v2121_v7 = vpop.eup %2120  ;;  %1570 = vst.msk [vmem:[%s2557_s20 + $0x10] sm:$0xff] %vm1567_vm1, %v2119_v4  ;;  %2146 = vpow2.f32 %v1783_v2  ;;  %v1782_v8 = vmul.f32 -1.442695, %v1307_v3  ;;  %v1322_v9 = vadd.f32 %v2058_v6, %v2534_v48 }
 0x28e   : > { %v2123_v10 = vpop.eup %2122  ;;  %2148 = vrcp.f32 %v1482_v5  ;;  %v1481_v11 = vadd.f32 1.0, %v2121_v7  ;;  %v1316_v12 = vpop.f32.mrf.mxu0 }
 0x28f   : > { %v2125_v13 = vpop.eup %2124  ;;  %1573 = vst.msk [vmem:[%s2557_s20 + $0x28] sm:$0xff] %vm1567_vm1, %v2123_v10  ;;  %2150 = vpow2.f32 %v1782_v8  ;;  %v1785_v15 = vmul.f32 -1.442695, %v1322_v9  ;;  %v1317_v16 = vadd.f32 %v2534_v48, %v1316_v12 }
 0x290   : > { %v2127_v17 = vpop.eup %2126  ;;  %2152 = vrcp.f32 %v1481_v11  ;;  %v1484_v18 = vadd.f32 1.0, %v2125_v13  ;;  %v2061_v19 = vpop.f32.mrf.mxu0 }
 0x291   : > { %v2129_v44 = vpop.eup %2128  ;;  %1572 = vst.msk [vmem:[%s2557_s20 + $0x20] sm:$0xff] %vm1567_vm1, %v2127_v17  ;;  %2154 = vpow2.f32 %v1785_v15  ;;  %v1784_v20 = vmul.f32 -1.442695, %v1317_v16  ;;  %v1332_v21 = vadd.f32 %v2061_v19, %v2534_v48 }
 0x292   : > { %v2131_v22 = vpop.eup %2130  ;;  %2156 = vrcp.f32 %v1484_v18  ;;  %v1483_v23 = vadd.f32 1.0, %v2129_v44  ;;  %v1326_v24 = vpop.f32.mrf.mxu0 }
 0x293   : > { %v2133_v25 = vpop.eup %2132  ;;  %1575 = vst.msk [vmem:[%s2557_s20 + $0x38] sm:$0xff] %vm1567_vm1, %v2131_v22  ;;  %2158 = vpow2.f32 %v1784_v20  ;;  %v1787_v26 = vmul.f32 -1.442695, %v1332_v21  ;;  %v1327_v27 = vadd.f32 %v2534_v48, %v1326_v24 }
 0x294   : > { %v2135_v28 = vpop.eup %2134  ;;  %2160 = vrcp.f32 %v1483_v23  ;;  %v1486_v29 = vadd.f32 1.0, %v2133_v25  ;;  %v2064_v30 = vpop.f32.mrf.mxu0 }
 0x295   : > { %v2137_v31 = vpop.eup %2136  ;;  %1574 = vst.msk [vmem:[%s2557_s20 + $0x30] sm:$0xff] %vm1567_vm1, %v2135_v28  ;;  %2162 = vpow2.f32 %v1787_v26  ;;  %v1786_v32 = vmul.f32 -1.442695, %v1327_v27  ;;  %v1342_v33 = vadd.f32 %v2064_v30, %v2534_v48 }
 0x296   : > { %v2139_v34 = vpop.eup %2138  ;;  %2164 = vrcp.f32 %v1486_v29  ;;  %v1485_v35 = vadd.f32 1.0, %v2137_v31  ;;  %v1336_v36 = vpop.f32.mrf.mxu0 }
 0x297   : > { %v2141_v37 = vpop.eup %2140  ;;  %v1488_v38 = vadd.f32 1.0, %v2139_v34  ;;  %2166 = vpow2.f32 %v1786_v32  ;;  %v1789_v39 = vmul.f32 -1.442695, %v1342_v33  ;;  %v1337_v40 = vadd.f32 %v2534_v48, %v1336_v36 }
 0x298   : > { %v2143_v41 = vpop.eup %2142  ;;  %1577 = vst.msk [vmem:[%s2557_s20 + $0x48] sm:$0xff] %vm1567_vm1, %v2141_v37  ;;  %2168 = vrcp.f32 %v1485_v35  ;;  %v2067_v42 = vpop.f32.mrf.mxu0 }
 0x299   : > { %v2145_v43 = vpop.eup %2144  ;;  %2170 = vrcp.f32 %v1488_v38  ;;  %v1487_v45 = vadd.f32 1.0, %v2143_v41  ;;  %v1788_v46 = vmul.f32 -1.442695, %v1337_v40  ;;  %v1352_v47 = vadd.f32 %v2067_v42, %v2534_v48 }
 0x29a   : > { %v2147_v49 = vpop.eup %2146  ;;  %1576 = vst.msk [vmem:[%s2557_s20 + $0x40] sm:$0xff] %vm1567_vm1, %v2145_v43  ;;  %2172 = vpow2.f32 %v1789_v39  ;;  %v1346_v50 = vpop.f32.mrf.mxu0 }
 0x29b   : > { %v2149_v51 = vpop.eup %2148  ;;  %2174 = vrcp.f32 %v1487_v45  ;;  %v1490_v14 = vadd.f32 1.0, %v2147_v49  ;;  %v1791_v52 = vmul.f32 -1.442695, %v1352_v47  ;;  %v1347_v53 = vadd.f32 %v2534_v48, %v1346_v50 }
 0x29c   : > { %v2151_v54 = vpop.eup %2150  ;;  %1579 = vst.msk [vmem:[%s2557_s20 + $0x58] sm:$0xff] %vm1567_vm1, %v2149_v51  ;;  %2176 = vpow2.f32 %v1788_v46  ;;  %v2070_v55 = vpop.f32.mrf.mxu0 }
 0x29d   : > { %v2153_v56 = vpop.eup %2152  ;;  %2178 = vrcp.f32 %v1490_v14  ;;  %v1489_v57 = vadd.f32 1.0, %v2151_v54  ;;  %v1790_v58 = vmul.f32 -1.442695, %v1347_v53  ;;  %v1362_v59 = vadd.f32 %v2070_v55, %v2534_v48 }
 0x29e   : > { %v2155_v60 = vpop.eup %2154  ;;  %1578 = vst.msk [vmem:[%s2557_s20 + $0x50] sm:$0xff] %vm1567_vm1, %v2153_v56  ;;  %2180 = vpow2.f32 %v1791_v52  ;;  %v1356_v61 = vpop.f32.mrf.mxu0 }
 0x29f   : > { %v2157_v62 = vpop.eup %2156  ;;  %2182 = vrcp.f32 %v1489_v57  ;;  %v1492_v63 = vadd.f32 1.0, %v2155_v60  ;;  %v1793_v0 = vmul.f32 -1.442695, %v1362_v59  ;;  %v1357_v1 = vadd.f32 %v2534_v48, %v1356_v61 }
 0x2a0   : > { %v2159_v2 = vpop.eup %2158  ;;  %1581 = vst.msk [vmem:[%s2557_s20 + $0x68] sm:$0xff] %vm1567_vm1, %v2157_v62  ;;  %2184 = vpow2.f32 %v1790_v58  ;;  %v2073_v3 = vpop.f32.mrf.mxu0 }
 0x2a1   : > { %v2161_v4 = vpop.eup %2160  ;;  %2186 = vrcp.f32 %v1492_v63  ;;  %v1491_v5 = vadd.f32 1.0, %v2159_v2  ;;  %v1792_v6 = vmul.f32 -1.442695, %v1357_v1  ;;  %v1372_v7 = vadd.f32 %v2073_v3, %v2534_v48 }
 0x2a2   : > { %v2163_v8 = vpop.eup %2162  ;;  %1580 = vst.msk [vmem:[%s2557_s20 + $0x60] sm:$0xff] %vm1567_vm1, %v2161_v4  ;;  %2188 = vpow2.f32 %v1793_v0  ;;  %v1366_v9 = vpop.f32.mrf.mxu0 }
 0x2a3   : > { %v2165_v10 = vpop.eup %2164  ;;  %2190 = vrcp.f32 %v1491_v5  ;;  %v1494_v11 = vadd.f32 1.0, %v2163_v8  ;;  %v1795_v12 = vmul.f32 -1.442695, %v1372_v7  ;;  %v1367_v13 = vadd.f32 %v2534_v48, %v1366_v9 }
 0x2a4   : > { %v2167_v15 = vpop.eup %2166  ;;  %1583 = vst.msk [vmem:[%s2557_s20 + $0x78] sm:$0xff] %vm1567_vm1, %v2165_v10  ;;  %2192 = vpow2.f32 %v1792_v6 }
 0x2a5   : > { %v2169_v16 = vpop.eup %2168  ;;  %2194 = vrcp.f32 %v1494_v11  ;;  %v1493_v17 = vadd.f32 1.0, %v2167_v15  ;;  %v1794_v18 = vmul.f32 -1.442695, %v1367_v13 }
 0x2a6   : > { %v2171_v19 = vpop.eup %2170  ;;  %1582 = vst.msk [vmem:[%s2557_s20 + $0x70] sm:$0xff] %vm1567_vm1, %v2169_v16  ;;  %2196 = vpow2.f32 %v1795_v12 }
 0x2a7   : > { %v2173_v44 = vpop.eup %2172  ;;  %1585 = vst.msk [vmem:[%s2557_s20 + $0x88] sm:$0xff] %vm1567_vm1, %v2171_v19  ;;  %2198 = vrcp.f32 %v1493_v17 }
 0x2a8   : > { %v2175_v48 = vpop.eup %2174  ;;  %v1496_v20 = vadd.f32 1.0, %v2173_v44  ;;  %2200 = vpow2.f32 %v1794_v18 }
 0x2a9   : > { %v2177_v21 = vpop.eup %2176  ;;  %1584 = vst.msk [vmem:[%s2557_s20 + $0x80] sm:$0xff] %vm1567_vm1, %v2175_v48 }
 0x2aa   : > { %v2179_v22 = vpop.eup %2178  ;;  %2202 = vrcp.f32 %v1496_v20  ;;  %v1495_v23 = vadd.f32 1.0, %v2177_v21 }
 0x2ab   : > { %v2181_v24 = vpop.eup %2180  ;;  %1587 = vst.msk [vmem:[%s2557_s20 + $0x98] sm:$0xff] %vm1567_vm1, %v2179_v22 }
 0x2ac   : > { %v2183_v25 = vpop.eup %2182  ;;  %2204 = vrcp.f32 %v1495_v23  ;;  %v1498_v26 = vadd.f32 1.0, %v2181_v24 }
 0x2ad   : > { %v2185_v27 = vpop.eup %2184  ;;  %1586 = vst.msk [vmem:[%s2557_s20 + $0x90] sm:$0xff] %vm1567_vm1, %v2183_v25 }
 0x2ae   : > { %v2187_v28 = vpop.eup %2186  ;;  %2206 = vrcp.f32 %v1498_v26  ;;  %v1497_v29 = vadd.f32 1.0, %v2185_v27 }
 0x2af   : > { %v2189_v30 = vpop.eup %2188  ;;  %1589 = vst.msk [vmem:[%s2557_s20 + $0xa8] sm:$0xff] %vm1567_vm1, %v2187_v28 }
 0x2b0   : > { %v2191_v31 = vpop.eup %2190  ;;  %2208 = vrcp.f32 %v1497_v29  ;;  %v1500_v32 = vadd.f32 1.0, %v2189_v30 }
 0x2b1   : > { %v2193_v33 = vpop.eup %2192  ;;  %1588 = vst.msk [vmem:[%s2557_s20 + $0xa0] sm:$0xff] %vm1567_vm1, %v2191_v31 }
 0x2b2   : > { %v2195_v34 = vpop.eup %2194  ;;  %2210 = vrcp.f32 %v1500_v32  ;;  %v1499_v35 = vadd.f32 1.0, %v2193_v33 }
 0x2b3   : > { %v2197_v36 = vpop.eup %2196  ;;  %1591 = vst.msk [vmem:[%s2557_s20 + $0xb8] sm:$0xff] %vm1567_vm1, %v2195_v34 }
 0x2b4   : > { %v2199_v37 = vpop.eup %2198  ;;  %2212 = vrcp.f32 %v1499_v35  ;;  %v1502_v38 = vadd.f32 1.0, %v2197_v36 }
 0x2b5   : > { %v2201_v39 = vpop.eup %2200  ;;  %1590 = vst.msk [vmem:[%s2557_s20 + $0xb0] sm:$0xff] %vm1567_vm1, %v2199_v37 }
 0x2b6   : > { %2214 = vrcp.f32 %v1502_v38  ;;  %v1501_v40 = vadd.f32 1.0, %v2201_v39 }
 0x2b7   : > { %v2203_v41 = vpop.eup %2202 }
 0x2b8   : > { %1593 = vst.msk [vmem:[%s2557_s20 + $0xc8] sm:$0xff] %vm1567_vm1, %v2203_v41  ;;  %2216 = vrcp.f32 %v1501_v40 }
 0x2b9   : > { %v2205_v42 = vpop.eup %2204 }
 0x2ba   : > { %1592 = vst.msk [vmem:[%s2557_s20 + $0xc0] sm:$0xff] %vm1567_vm1, %v2205_v42 }
 0x2bb   : > { %v2207_v43 = vpop.eup %2206 }
 0x2bc   : > { %1595 = vst.msk [vmem:[%s2557_s20 + $0xd8] sm:$0xff] %vm1567_vm1, %v2207_v43 }
 0x2bd   : > { %v2209_v45 = vpop.eup %2208 }
 0x2be   : > { %1594 = vst.msk [vmem:[%s2557_s20 + $0xd0] sm:$0xff] %vm1567_vm1, %v2209_v45 }
 0x2bf   : > { %v2211_v46 = vpop.eup %2210 }
 0x2c0   : > { %1597 = vst.msk [vmem:[%s2557_s20 + $0xe8] sm:$0xff] %vm1567_vm1, %v2211_v46 }
 0x2c1   : > { %v2213_v47 = vpop.eup %2212 }
 0x2c2   : > { %1596 = vst.msk [vmem:[%s2557_s20 + $0xe0] sm:$0xff] %vm1567_vm1, %v2213_v47 }
 0x2c3   : > { %v2215_v49 = vpop.eup %2214 }
 0x2c4   : > { %1599 = vst.msk [vmem:[%s2557_s20 + $0xf8] sm:$0xff] %vm1567_vm1, %v2215_v49 }
 0x2c5   : > { %v2217_v50 = vpop.eup %2216 }
 0x2c6   : > { %1598 = vst.msk [vmem:[%s2557_s20 + $0xf0] sm:$0xff] %vm1567_vm1, %v2217_v50 }
 0x2c7 PF: > { %s17_s24 = sadd.s32 1, %s2224_s24  }
 0x2c8   : > { %p14_p4 = scmp.ge.s32.totalorder %s17_s24, 4  }
 0x2ca   :  { %16 = sbr.rel (!%p14_p4) target bundleno = 1 (0x1), region = 78 }

</bundles_post_ra>
